<compile_context>
chip_gen: v7x
topology: tpu7x:2x2x1
jax: 0.10.0
libtpu: 0.0.40
codegen_flags: <defaults>
</compile_context>

<pallas_src>
import functools

import jax
import jax.numpy as jnp
from jax.experimental import pallas as pl
from jax.experimental.pallas import tpu as pltpu

GP = 8   # `gp` in the reference script
PT = 16  # `pt` in the reference script


def _conv_adapt_kernel(xe_ref, wt_ref, b_ref, o_ref, *, h, w):
    # xe_ref: (1, Cin, M + 2*(W+1)) bf16  flattened image, zero-padded on lanes
    # wt_ref: (Cout, 9*Cin)         bf16  fused (3x3 + centre-tap 1x1) block-diag weights
    # b_ref : (Cout, 1)             f32   fused bias (bg + bp)
    # o_ref : (1, Cout, M)          f32   output tile, channel-major (NCHW flattened)
    m = h * w

    # Column masks: in the flattened H*W layout a horizontal tap that crosses a
    # row boundary would read the neighbouring row's pixel -> force it to zero.
    j_idx = jax.lax.broadcasted_iota(jnp.int32, (1, m), 1) % w
    not_first_col = j_idx != 0        # valid lanes for kw == 0 taps (read j-1)
    not_last_col = j_idx != (w - 1)   # valid lanes for kw == 2 taps (read j+1)

    pieces = []
    for kh in range(3):
        for kw in range(3):
            # tap offset in the flattened axis, shifted into the padded buffer
            start = (kh - 1) * w + (kw - 1) + (w + 1)   # static, in [0, 2*(W+1)]
            piece = xe_ref[0, :, pl.ds(start, m)]        # (Cin, M) bf16
            if kw == 0:
                piece = jnp.where(not_first_col, piece, jnp.zeros_like(piece))
            elif kw == 2:
                piece = jnp.where(not_last_col, piece, jnp.zeros_like(piece))
            pieces.append(piece)
    xcol = jnp.concatenate(pieces, axis=0)               # (9*Cin, M) bf16

    acc = jnp.dot(wt_ref[...], xcol, preferred_element_type=jnp.float32)
    o_ref[0] = (acc + b_ref[...]).astype(o_ref.dtype)


def _block_diag_embed(w_pt, cin, cout, groups):
    """PyTorch grouped-conv weight [Cout, Cin/groups, KH, KW] -> dense
    [KH*KW, Cin, Cout] with zeros outside each group's block."""
    cout_g = cout // groups
    cin_g = cin // groups
    kh, kw = w_pt.shape[2], w_pt.shape[3]
    w_full = jnp.zeros((kh, kw, cin, cout), dtype=w_pt.dtype)
    for g in range(groups):
        # [cout_g, cin_g, KH, KW] -> [KH, KW, cin_g, cout_g]
        blk = jnp.transpose(w_pt[g * cout_g:(g + 1) * cout_g], (2, 3, 1, 0))
        w_full = w_full.at[:, :, g * cin_g:(g + 1) * cin_g,
                           g * cout_g:(g + 1) * cout_g].set(blk)
    return w_full.reshape(kh * kw, cin, cout)


@functools.partial(jax.jit, static_argnames=("groups_g", "groups_p"))
def conv_adapt_forward(x_nchw, wg_pt, bg, wp_pt, bp, *, groups_g, groups_p):
    """Forward pass of ConvAdapt. x_nchw: [N, Cin, H, W] (PyTorch convention)."""
    n, cin, h, w = x_nchw.shape
    cout = wg_pt.shape[0]
    m = h * w
    k9 = 9 * cin
    m_ext = m + 2 * (w + 1)

    # ---- glue (plain JAX): algebraic fusion + layout plumbing ----------------
    # The 1x1 conv reads exactly the same centre window as tap (1,1) of the 3x3
    # conv, so fold it into that tap and pre-sum the biases (exact rewrite).
    wg_full = _block_diag_embed(wg_pt, cin, cout, groups_g)       # (9, Cin, Cout)
    wp_full = _block_diag_embed(wp_pt, cin, cout, groups_p)[0]    # (Cin, Cout)
    w_fused = wg_full.at[4].add(wp_full)                          # centre tap
    w_t = w_fused.reshape(k9, cout).T.astype(jnp.bfloat16)        # (Cout, 9*Cin)
    bias = (bg + bp).reshape(cout, 1).astype(jnp.float32)

    # Flatten the spatial axis onto lanes and zero-pad by W+1 on each side so
    # that every 3x3 tap becomes a static in-bounds lane slice in the kernel.
    x_ext = jnp.pad(x_nchw.reshape(n, cin, m).astype(jnp.bfloat16),
                    ((0, 0), (0, 0), (w + 1, w + 1)))             # (N, Cin, Mext)

    kernel = functools.partial(_conv_adapt_kernel, h=h, w=w)

    # TODO(synk): for large H*W, tile the spatial (lane) axis with overlapping
    # halo windows instead of one full-image block per grid step.
    out = pl.pallas_call(
        kernel,
        out_shape=jax.ShapeDtypeStruct((n, cout, m), x_nchw.dtype),
        grid_spec=pltpu.PrefetchScalarGridSpec(
            num_scalar_prefetch=0,
            grid=(n,),
            in_specs=[
                pl.BlockSpec((1, cin, m_ext), lambda b: (b, 0, 0)),
                # Tiny resident constant blocks (weights + bias).
                pl.BlockSpec((cout, k9), lambda b: (0, 0)),
                pl.BlockSpec((cout, 1), lambda b: (0, 0)),
            ],
            out_specs=pl.BlockSpec((1, cout, m), lambda b: (b, 0, 0)),
        ),
        compiler_params=pltpu.CompilerParams(
            dimension_semantics=("parallel",)),
    )(x_ext, w_t, bias)

    # Output is already channel-major: just unflatten the spatial axis -> NCHW.
    return out.reshape(n, cout, h, w)


def _reference(x_nchw, wg_pt, bg, wp_pt, bp, groups_g, groups_p):
    """Pure-JAX f32 reference matching PyTorch semantics (lax grouped convs)."""
    dn = ("NCHW", "OIHW", "NCHW")
    out_g = jax.lax.conv_general_dilated(
        x_nchw, wg_pt, window_strides=(1, 1), padding=((1, 1), (1, 1)),
        dimension_numbers=dn, feature_group_count=groups_g)
    out_p = jax.lax.conv_general_dilated(
        x_nchw, wp_pt, window_strides=(1, 1), padding="VALID",
        dimension_numbers=dn, feature_group_count=groups_p)
    return (out_g + bg[None, :, None, None]) + (out_p + bp[None, :, None, None])


if __name__ == "__main__":
    # Module hyperparameters (divisibility-consistent with gp=8, pt=16).
    in_channels, out_channels, p = 16, 16, 16
    groups_g = p // GP   # 2
    groups_p = p // PT   # 1
    N, H, W = 2, 16, 16

    key = jax.random.PRNGKey(0)
    kx, kwg, kbg, kwp, kbp = jax.random.split(key, 5)

    x = jax.random.normal(kx, (N, in_channels, H, W), dtype=jnp.float32)
    # Deterministic synthetic parameters (PyTorch Conv2d weight layouts).
    wg = 0.1 * jax.random.normal(
        kwg, (out_channels, in_channels // groups_g, 3, 3), dtype=jnp.float32)
    bg = 0.1 * jax.random.normal(kbg, (out_channels,), dtype=jnp.float32)
    wp = 0.1 * jax.random.normal(
        kwp, (out_channels, in_channels // groups_p, 1, 1), dtype=jnp.float32)
    bp = 0.1 * jax.random.normal(kbp, (out_channels,), dtype=jnp.float32)

    out = conv_adapt_forward(x, wg, bg, wp, bp,
                             groups_g=groups_g, groups_p=groups_p)
    out = jax.block_until_ready(out)

    ref = _reference(x, wg, bg, wp, bp, groups_g, groups_p)
    assert out.shape == (N, out_channels, H, W)
    # bf16 MXU operands (f32 accumulation) vs exact-f32 reference -> loose tol.
    assert jnp.allclose(out, ref, rtol=5e-2, atol=5e-2), "mismatch vs reference"

    print("KERNEL_OK")
</pallas_src>

<mosaic_0001>
module attributes {stable_mosaic.version = 11 : i64} {
  func.func @_conv_adapt_kernel(%arg0: i32, %arg1: memref<1x16x290xbf16, #tpu.memory_space<vmem>>, %arg2: memref<16x144xbf16, #tpu.memory_space<vmem>>, %arg3: memref<16x1xf32, #tpu.memory_space<vmem>>, %arg4: memref<1x16x256xf32, #tpu.memory_space<vmem>>) attributes {dimension_semantics = [#tpu.dimension_semantics<parallel>], iteration_bounds = array<i64: 2>, scalar_prefetch = 0 : i64, scratch_operands = 0 : i64, tpu.core_type = #tpu.core_type<tc>, window_params = [{transform_indices = @transform_0, window_bounds = array<i64: 1, 16, 290>}, {pipeline_mode = #tpu.pipeline_mode<synchronous>, transform_indices = @transform_1, window_bounds = array<i64: 16, 144>}, {pipeline_mode = #tpu.pipeline_mode<synchronous>, transform_indices = @transform_2, window_bounds = array<i64: 16, 1>}, {transform_indices = @transform_3, window_bounds = array<i64: 1, 16, 256>}]} {
    %0 = tpu.iota {dimensions = array<i32: 1>} : vector<1x256xi32>
    %c16_i32 = arith.constant 16 : i32
    %c0_i32 = arith.constant 0 : i32
    %1 = arith.cmpi eq, %c16_i32, %c0_i32 : i32
    %c1_i32 = arith.constant 1 : i32
    %2 = arith.select %1, %c1_i32, %c16_i32 : i32
    %3 = vector.broadcast %2 : i32 to vector<1x256xi32>
    %4 = arith.remsi %0, %3 : vector<1x256xi32>
    %c0_i32_0 = arith.constant 0 : i32
    %5 = vector.broadcast %c0_i32_0 : i32 to vector<1x256xi32>
    %6 = arith.cmpi ne, %4, %5 : vector<1x256xi32>
    %c0_i32_1 = arith.constant 0 : i32
    %7 = vector.broadcast %c0_i32_1 : i32 to vector<1x256xi32>
    %8 = arith.cmpi slt, %4, %7 : vector<1x256xi32>
    %c0_i32_2 = arith.constant 0 : i32
    %9 = arith.cmpi slt, %2, %c0_i32_2 : i32
    %10 = vector.broadcast %9 : i1 to vector<1x256xi1>
    %11 = vector.broadcast %10 : vector<1x256xi1> to vector<1x256xi1>
    %12 = arith.xori %8, %11 : vector<1x256xi1>
    %13 = arith.andi %12, %6 : vector<1x256xi1>
    %14 = vector.broadcast %2 : i32 to vector<1x256xi32>
    %15 = arith.addi %4, %14 : vector<1x256xi32>
    %16 = arith.select %13, %15, %4 : vector<1x256xi1>, vector<1x256xi32>
    %c0_i32_3 = arith.constant 0 : i32
    %17 = vector.broadcast %c0_i32_3 : i32 to vector<1x256xi32>
    %18 = arith.cmpi ne, %16, %17 : vector<1x256xi32>
    %c15_i32 = arith.constant 15 : i32
    %19 = vector.broadcast %c15_i32 : i32 to vector<1x256xi32>
    %20 = arith.cmpi ne, %16, %19 : vector<1x256xi32>
    %c0 = arith.constant 0 : index
    %c0_4 = arith.constant 0 : index
    %c0_5 = arith.constant 0 : index
    %21 = vector.load %arg1[%c0, %c0_4, %c0_5] : memref<1x16x290xbf16, #tpu.memory_space<vmem>>, vector<1x16x256xbf16>
    %22 = vector.shape_cast %21 : vector<1x16x256xbf16> to vector<16x256xbf16>
    %cst = arith.constant 0.000000e+00 : bf16
    %23 = vector.broadcast %cst : bf16 to vector<16x256xbf16>
    %24 = vector.shape_cast %18 : vector<1x256xi1> to vector<1x256xi1>
    %25 = vector.broadcast %24 : vector<1x256xi1> to vector<16x256xi1>
    %26 = arith.select %25, %22, %23 : vector<16x256xi1>, vector<16x256xbf16>
    %c0_6 = arith.constant 0 : index
    %c0_7 = arith.constant 0 : index
    %c1 = arith.constant 1 : index
    %27 = vector.load %arg1[%c0_6, %c0_7, %c1] : memref<1x16x290xbf16, #tpu.memory_space<vmem>>, vector<1x16x256xbf16>
    %28 = vector.shape_cast %27 : vector<1x16x256xbf16> to vector<16x256xbf16>
    %c0_8 = arith.constant 0 : index
    %c0_9 = arith.constant 0 : index
    %c2 = arith.constant 2 : index
    %29 = vector.load %arg1[%c0_8, %c0_9, %c2] : memref<1x16x290xbf16, #tpu.memory_space<vmem>>, vector<1x16x256xbf16>
    %30 = vector.shape_cast %29 : vector<1x16x256xbf16> to vector<16x256xbf16>
    %cst_10 = arith.constant 0.000000e+00 : bf16
    %31 = vector.broadcast %cst_10 : bf16 to vector<16x256xbf16>
    %32 = vector.shape_cast %20 : vector<1x256xi1> to vector<1x256xi1>
    %33 = vector.broadcast %32 : vector<1x256xi1> to vector<16x256xi1>
    %34 = arith.select %33, %30, %31 : vector<16x256xi1>, vector<16x256xbf16>
    %c0_11 = arith.constant 0 : index
    %c0_12 = arith.constant 0 : index
    %c16 = arith.constant 16 : index
    %35 = vector.load %arg1[%c0_11, %c0_12, %c16] : memref<1x16x290xbf16, #tpu.memory_space<vmem>>, vector<1x16x256xbf16>
    %36 = vector.shape_cast %35 : vector<1x16x256xbf16> to vector<16x256xbf16>
    %cst_13 = arith.constant 0.000000e+00 : bf16
    %37 = vector.broadcast %cst_13 : bf16 to vector<16x256xbf16>
    %38 = vector.shape_cast %18 : vector<1x256xi1> to vector<1x256xi1>
    %39 = vector.broadcast %38 : vector<1x256xi1> to vector<16x256xi1>
    %40 = arith.select %39, %36, %37 : vector<16x256xi1>, vector<16x256xbf16>
    %c0_14 = arith.constant 0 : index
    %c0_15 = arith.constant 0 : index
    %c17 = arith.constant 17 : index
    %41 = vector.load %arg1[%c0_14, %c0_15, %c17] : memref<1x16x290xbf16, #tpu.memory_space<vmem>>, vector<1x16x256xbf16>
    %42 = vector.shape_cast %41 : vector<1x16x256xbf16> to vector<16x256xbf16>
    %c0_16 = arith.constant 0 : index
    %c0_17 = arith.constant 0 : index
    %c18 = arith.constant 18 : index
    %43 = vector.load %arg1[%c0_16, %c0_17, %c18] : memref<1x16x290xbf16, #tpu.memory_space<vmem>>, vector<1x16x256xbf16>
    %44 = vector.shape_cast %43 : vector<1x16x256xbf16> to vector<16x256xbf16>
    %cst_18 = arith.constant 0.000000e+00 : bf16
    %45 = vector.broadcast %cst_18 : bf16 to vector<16x256xbf16>
    %46 = vector.shape_cast %20 : vector<1x256xi1> to vector<1x256xi1>
    %47 = vector.broadcast %46 : vector<1x256xi1> to vector<16x256xi1>
    %48 = arith.select %47, %44, %45 : vector<16x256xi1>, vector<16x256xbf16>
    %c0_19 = arith.constant 0 : index
    %c0_20 = arith.constant 0 : index
    %c32 = arith.constant 32 : index
    %49 = vector.load %arg1[%c0_19, %c0_20, %c32] : memref<1x16x290xbf16, #tpu.memory_space<vmem>>, vector<1x16x256xbf16>
    %50 = vector.shape_cast %49 : vector<1x16x256xbf16> to vector<16x256xbf16>
    %cst_21 = arith.constant 0.000000e+00 : bf16
    %51 = vector.broadcast %cst_21 : bf16 to vector<16x256xbf16>
    %52 = vector.shape_cast %18 : vector<1x256xi1> to vector<1x256xi1>
    %53 = vector.broadcast %52 : vector<1x256xi1> to vector<16x256xi1>
    %54 = arith.select %53, %50, %51 : vector<16x256xi1>, vector<16x256xbf16>
    %c0_22 = arith.constant 0 : index
    %c0_23 = arith.constant 0 : index
    %c33 = arith.constant 33 : index
    %55 = vector.load %arg1[%c0_22, %c0_23, %c33] : memref<1x16x290xbf16, #tpu.memory_space<vmem>>, vector<1x16x256xbf16>
    %56 = vector.shape_cast %55 : vector<1x16x256xbf16> to vector<16x256xbf16>
    %c0_24 = arith.constant 0 : index
    %c0_25 = arith.constant 0 : index
    %c34 = arith.constant 34 : index
    %57 = vector.load %arg1[%c0_24, %c0_25, %c34] : memref<1x16x290xbf16, #tpu.memory_space<vmem>>, vector<1x16x256xbf16>
    %58 = vector.shape_cast %57 : vector<1x16x256xbf16> to vector<16x256xbf16>
    %cst_26 = arith.constant 0.000000e+00 : bf16
    %59 = vector.broadcast %cst_26 : bf16 to vector<16x256xbf16>
    %60 = vector.shape_cast %20 : vector<1x256xi1> to vector<1x256xi1>
    %61 = vector.broadcast %60 : vector<1x256xi1> to vector<16x256xi1>
    %62 = arith.select %61, %58, %59 : vector<16x256xi1>, vector<16x256xbf16>
    %63 = tpu.concatenate %26, %28, %34, %40, %42, %48, %54, %56, %62 in 0 : vector<16x256xbf16>, vector<16x256xbf16>, vector<16x256xbf16>, vector<16x256xbf16>, vector<16x256xbf16>, vector<16x256xbf16>, vector<16x256xbf16>, vector<16x256xbf16>, vector<16x256xbf16> -> vector<144x256xbf16>
    %c0_27 = arith.constant 0 : index
    %c0_28 = arith.constant 0 : index
    %64 = vector.load %arg2[%c0_27, %c0_28] : memref<16x144xbf16, #tpu.memory_space<vmem>>, vector<16x144xbf16>
    %cst_29 = arith.constant dense<0.000000e+00> : vector<16x256xf32>
    %65 = tpu.matmul %64, %63, %cst_29 {dimension_numbers = #tpu.dot_dimension_numbers<[1], [0], [0], [1], [0, 0, 1, 1], [], []>} : vector<16x144xbf16>, vector<144x256xbf16>, vector<16x256xf32> -> vector<16x256xf32>
    %c0_30 = arith.constant 0 : index
    %c0_31 = arith.constant 0 : index
    %66 = vector.load %arg3[%c0_30, %c0_31] : memref<16x1xf32, #tpu.memory_space<vmem>>, vector<16x1xf32>
    %67 = vector.broadcast %66 : vector<16x1xf32> to vector<16x256xf32>
    %68 = arith.addf %65, %67 : vector<16x256xf32>
    %c0_32 = arith.constant 0 : index
    %c0_33 = arith.constant 0 : index
    %c0_34 = arith.constant 0 : index
    %69 = vector.load %arg4[%c0_32, %c0_33, %c0_34] : memref<1x16x256xf32, #tpu.memory_space<vmem>>, vector<1x16x256xf32>
    %70 = vector.shape_cast %69 : vector<1x16x256xf32> to vector<16x256xf32>
    %71 = vector.shape_cast %68 : vector<16x256xf32> to vector<1x16x256xf32>
    tpu.vector_store %arg4[%c0_32, %c0_33, %c0_34], %71 {strides = array<i32>} : memref<1x16x256xf32, #tpu.memory_space<vmem>>, vector<1x16x256xf32>,
    return
  }
  func.func @transform_0(%arg0: i32) -> (i32, i32, i32) {
    %c0_i32 = arith.constant 0 : i32
    %c0_i32_0 = arith.constant 0 : i32
    %c0_i32_1 = arith.constant 0 : i32
    return %arg0, %c0_i32, %c0_i32_0 : i32, i32, i32
  }
  func.func @transform_1(%arg0: i32) -> (i32, i32) {
    %c0_i32 = arith.constant 0 : i32
    %c0_i32_0 = arith.constant 0 : i32
    %c0_i32_1 = arith.constant 0 : i32
    return %c0_i32, %c0_i32_0 : i32, i32
  }
  func.func @transform_2(%arg0: i32) -> (i32, i32) {
    %c0_i32 = arith.constant 0 : i32
    %c0_i32_0 = arith.constant 0 : i32
    %c0_i32_1 = arith.constant 0 : i32
    return %c0_i32, %c0_i32_0 : i32, i32
  }
  func.func @transform_3(%arg0: i32) -> (i32, i32, i32) {
    %c0_i32 = arith.constant 0 : i32
    %c0_i32_0 = arith.constant 0 : i32
    %c0_i32_1 = arith.constant 0 : i32
    return %arg0, %c0_i32, %c0_i32_0 : i32, i32, i32
  }
}

</mosaic_0001>

<bundles_post_ra>
// kernel: conv_adapt_forward.1
= control target key start
LH: loop header
LB: loop body
LE: loop exit
PB: predicated region body
PF: predicated region fallthrough
CT: control target
= control target key end

     0   :  { %s690_s12 = smov 0   ;;  %s810_s0 = inlined_call_operand.vmem [shape: bf16[2,16,290], index: 0, kind: input, shape index: {}]   ;;  %s811_s1 = inlined_call_operand.vmem [shape: bf16[16,144], index: 1, kind: input, shape index: {}]   ;;  %s812_s2 = inlined_call_operand.vmem [shape: f32[16,1], index: 2, kind: input, shape index: {}]   ;;  %s813_s3 = inlined_call_operand.vmem [shape: f32[2,16,256], index: 3, kind: output, shape index: {}]  }
   0x1 LB: > { %s583_s13 = sadd.s32 4294967295, %s654_s12   ;;  %p587_p0 = scmp.ge.s32.totalorder %s654_s12, 1  ;;  %s654_s12 = sphi %s690_s12, %s13_s12  }
   0x2   : > { %p137_p1 = scmp.lt.s32.totalorder %s654_s12, 3 }
   0x4   : > { %p138_p2 = pnand %p587_p0, %p137_p1 }
   0x5   : > { %v174_v0 = vlaneseq (!%p138_p2)  ;;  %v656_v1 = vmov (!%p138_p2), 0   ;;  %p161_p3 = scmp.lt.s32.totalorder (!%p138_p2), %s583_s13, 1  ;;  %s657_s18 = smov (!%p138_p2), 18   ;;  %vm225_vm7 = vcmask (!%p138_p2), 15360   ;;  %vm237_vm8 = vcmask (!%p138_p2), 130048  }
   0x6   : > { %141 = sbr.rel (%p138_p2) target bundleno = 511 (0x1ff), region = 32  ;;  %640 = vset.pattern.permute.xlu1 (!%p138_p2), %v656_v1  ;;  %641 = vset.pattern.permute.xlu0 (!%p138_p2), %v656_v1  ;;  %s658_s19 = smov (!%p138_p2), 2   ;;  %vm307_vm13 = vcmask (!%p138_p2), 1039360   ;;  %vm248_vm14 = vcmask (!%p138_p2), 146432   ;;  %v647_v7 = vld [vmem:[%s811_s1 + $0x4] ss:$8 sps:$4 sm:$0xff] (!%p138_p2)  }
   0x7   : > { %v175_v2 = vand.u32 (!%p138_p2), 127, %v174_v0  ;;  %s659_s20 = smov (!%p138_p2), 32   ;;  %s660_s21 = smov (!%p138_p2), 16   ;;  %613 = vmatprep.mubr.msk.bf16.mxu0 (!%p138_p2), %vm237_vm8, %v647_v7 }
   0x8   : > { %s661_s22 = smov (!%p138_p2), 34   ;;  %s662_s23 = smov (!%p138_p2), 127  }
   0x9   : > { %v176_v3 = vadd.s32 (!%p138_p2), 128, %v175_v2  ;;  %v181_v4 = vand.u32 (!%p138_p2), 15, %v175_v2  ;;  %s663_s24 = smov (!%p138_p2), 111   ;;  %s664_s25 = smov (!%p138_p2), 126  }
   0xa   : > { %s665_s26 = smov (!%p138_p2), 96   ;;  %s666_s27 = smov (!%p138_p2), 112  }
   0xb   : > { %v188_v5 = vand.u32 (!%p138_p2), 15, %v176_v3  ;;  %vm203_vm0 = vcmp.ne.s32.totalorder (!%p138_p2), %v181_v4, 15  ;;  %vm201_vm1 = vcmp.ne.s32.totalorder (!%p138_p2), %v181_v4, 0  ;;  %s667_s28 = smov (!%p138_p2), 110   ;;  %s668_s29 = smov (!%p138_p2), 95  }
   0xc   : > { %s669_s5 = smov (!%p138_p2), 94  }
   0xd   : > { %s821_s13 = smov (!%p161_p3, %s583_s13), 1  ;;  %vm204_vm2 = vcmp.ne.s32.totalorder %v188_v5, 15  ;;  %vm202_vm3 = vcmp.ne.s32.totalorder %v188_v5, 0 }
   0xe   : > { %s617_s14 = smul.u32 24, %s821_s13  ;;  %vm220_vm4 = vmpackc.low %vm204_vm2, %vm203_vm0 }
   0xf   : > { %v221_v6 = vsel %vm220_vm4, 65537, %v656_v1  ;;  %vm704_vm5 = vmpackc.low %vm202_vm3, %vm201_vm1  ;;  %vm259_vm1 = vcmask 261120   ;;  %vm270_vm3 = vcmask 277504  }
  0x10   : > { %s165_s17 = scalar_lea.vmem %s810_s0, %s617_s14  ;;  %245 = vrot.lane.b32.xlu1 %v221_v6, %s657_s18  ;;  %222 = vrot.lane.b32.xlu0 %v221_v6, %s658_s19  ;;  %v233_v8 = vsel %vm704_vm5, 65537, %v656_v1  ;;  %s616_s14 = sshll.u32 %s821_s13, 5 }
  0x11   : > { %v710_v9 = vld [vmem:[%s165_s17] sm:$0xff]  ;;  %v712_v10 = vld [vmem:[%s165_s17 + $0xc] sm:$0xff]  ;;  %v718_v12 = vld [vmem:[%s165_s17 + $0x8] sm:$0xf] }
  0x12   : > { %v716_v11 = vcombine.high %v710_v9, %v712_v10  ;;  %v720_v13 = vld [vmem:[%s165_s17 + $0x14] sm:$0xf]  ;;  %v729_v15 = vcombine.low %v710_v9, %v712_v10  ;;  %v212_v16 = vsel %vm704_vm5, %v710_v9, 0  ;;  %v213_v17 = vsel %vm704_vm5, %v712_v10, 0  ;;  %s170_s17 = scalar_lea.vmem %s813_s3, %s616_s14 }
  0x13   : > { %v725_v14 = vcombine.low %v718_v12, %v720_v13  ;;  %v592_v18 = vcombine.high %v212_v16, %v213_v17  ;;  %v591_v19 = vcombine.low %v212_v16, %v213_v17 }
  0x14   : > { %256 = vrot.lane.b32.xlu1 %v233_v8, %s659_s20  ;;  %234 = vrot.lane.b32.xlu0 %v233_v8, %s660_s21 }
  0x15   : > { %481 = vmatprep.subr.bf16.mxu0 %v592_v18 }
  0x16   : > { %482 = vmatpush1.bf16.msra.mxu0 %v591_v19 }
  0x18   : > { %267 = vrot.lane.b32.xlu0 %v221_v6, %s661_s22  ;;  %303 = vrot.lane.b32.xlu1 %v716_v11, %s662_s23 }
  0x1c   : > { %305 = vrot.lane.b32.xlu0 %v725_v14, %s662_s23  ;;  %301 = vrot.lane.b32.xlu1 %v729_v15, %s662_s23 }
  0x20   : > { %362 = vrot.lane.b32.xlu0 %v716_v11, %s663_s24  ;;  %364 = vrot.lane.b32.xlu1 %v725_v14, %s663_s24 }
  0x24   : > { %360 = vrot.lane.b32.xlu0 %v729_v15, %s663_s24 }
  0x82   : > { %v246_v20 = vpop.permute.xlu1 %245  ;;  %v223_v21 = vpop.permute.xlu0 %222 }
  0x83   : > { %v224_v22 = vrot.slane %v223_v21, 4  ;;  %v247_v38 = vrot.slane %v246_v20, 4 }
  0x85   : > { %vm228_vm6 = vcmp.ne.s16.totalorder %v224_v22, 0  ;;  %v226_v29 = vsel %vm225_vm7, %v224_v22, %v223_v21  ;;  %v249_v50 = vsel %vm248_vm14, %v247_v38, %v246_v20  ;;  %vm251_vm0 = vcmp.ne.s16.totalorder %v247_v38, 0 }
  0x86   : > { %v257_v23 = vpop.permute.xlu1 %256  ;;  %v235_v24 = vpop.permute.xlu0 %234  ;;  %v230_v25 = vsel %vm228_vm6, %v718_v12, 0  ;;  %v232_v26 = vsel %vm228_vm6, %v720_v13, 0  ;;  %vm227_vm12 = vcmp.ne.s16.totalorder %v226_v29, 0  ;;  %vm250_vm15 = vcmp.ne.s16.totalorder %v249_v50, 0 }
  0x87   : > { %v258_v27 = vrot.slane %v257_v23, 4  ;;  %v236_v28 = vrot.slane %v235_v24, 4  ;;  %v598_v30 = vcombine.low %v230_v25, %v232_v26  ;;  %v229_v47 = vsel %vm227_vm12, %v710_v9, 0 }
  0x88   : > { %v231_v48 = vsel %vm227_vm12, %v712_v10, 0  ;;  %v252_v55 = vsel %vm250_vm15, %v710_v9, 0  ;;  %v254_v56 = vsel %vm250_vm15, %v712_v10, 0  ;;  %v253_v58 = vsel %vm251_vm0, %v718_v12, 0 }
  0x89   : > { %vm744_vm9 = vcmp.ne.s16.totalorder %v258_v27, 0  ;;  %v238_v32 = vsel %vm237_vm8, %v236_v28, %v235_v24  ;;  %vm749_vm10 = vcmp.ne.s16.totalorder %v236_v28, 0  ;;  %329 = vrot.lane.b32.xlu1 %v598_v30, %s664_s25  ;;  %v597_v53 = vcombine.high %v229_v47, %v231_v48 }
  0x8a   : > { %v268_v34 = vpop.permute.xlu0 %267  ;;  %v304_v35 = vpop.permute.xlu1 %303  ;;  %v264_v36 = vsel %vm744_vm9, %v718_v12, 0  ;;  %v266_v37 = vsel %vm744_vm9, %v720_v13, 0  ;;  %vm239_vm11 = vcmp.ne.s16.totalorder %v238_v32, 0  ;;  %v242_v39 = vsel %vm749_vm10, %v718_v12, 0 }
  0x8b   : > { %v244_v40 = vsel %vm749_vm10, %v720_v13, 0  ;;  %v607_v41 = vcombine.low %v264_v36, %v266_v37  ;;  %v241_v42 = vsel %vm239_vm11, %v710_v9, 0  ;;  %v243_v43 = vsel %vm239_vm11, %v712_v10, 0 }
  0x8c   : > { %v601_v44 = vcombine.low %v242_v39, %v244_v40  ;;  %v600_v52 = vcombine.high %v241_v42, %v243_v43  ;;  %v599_v54 = vcombine.low %v241_v42, %v243_v43  ;;  %v596_v57 = vcombine.low %v229_v47, %v231_v48 }
  0x8d   : > { %412 = vrot.lane.b32.xlu1 %v607_v41, %s665_s26  ;;  %v255_v59 = vsel %vm251_vm0, %v720_v13, 0  ;;  %v260_v60 = vsel %vm259_vm1, %v258_v27, %v257_v23  ;;  %v603_v61 = vcombine.high %v252_v55, %v254_v56  ;;  %v602_v63 = vcombine.low %v252_v55, %v254_v56 }
  0x8e   : > { %v306_v45 = vpop.permute.xlu0 %305  ;;  %v302_v46 = vpop.permute.xlu1 %301  ;;  %353 = vrot.lane.b32.xlu0 %v601_v44, %s666_s27  ;;  %v604_v62 = vcombine.low %v253_v58, %v255_v59  ;;  %vm261_vm2 = vcmp.ne.s16.totalorder %v260_v60, 0  ;;  %v269_v0 = vrot.slane %v268_v34, 4  ;;  %vm331_vm6 = vcmask 1031168  }
  0x8f   : > { %v309_v49 = vsel %vm307_vm13, %v304_v35, %v306_v45  ;;  %v308_v51 = vsel %vm307_vm13, %v302_v46, %v304_v35  ;;  %v263_v1 = vsel %vm261_vm2, %v710_v9, 0  ;;  %v265_v2 = vsel %vm261_vm2, %v712_v10, 0 }
  0x90   : > { %483 = vmatprep.subr.bf16.mxu0 %v309_v49  ;;  %v271_v3 = vsel %vm270_vm3, %v269_v0, %v268_v34  ;;  %vm273_vm4 = vcmp.ne.s16.totalorder %v269_v0, 0  ;;  %v606_v4 = vcombine.high %v263_v1, %v265_v2  ;;  %v605_v8 = vcombine.low %v263_v1, %v265_v2 }
  0x91   : > { %484 = vmatpush1.bf16.msra.mxu0 %v308_v51  ;;  %351 = vrot.lane.b32.xlu1 %v600_v52, %s666_s27  ;;  %vm272_vm5 = vcmp.ne.s16.totalorder %v271_v3, 0  ;;  %v275_v5 = vsel %vm273_vm4, %v718_v12, 0  ;;  %v277_v6 = vsel %vm273_vm4, %v720_v13, 0  ;;  %v456_v13 = vld [vmem:[%s812_s2] sm:$0xff]  ;;  %vm355_vm7 = vcmask 916480  }
  0x92   : > { %327 = vrot.lane.b32.xlu0 %v597_v53, %s664_s25  ;;  %v276_v16 = vsel %vm272_vm5, %v712_v10, 0  ;;  %v365_v10 = vpop.permute.xlu1 %364  ;;  %vm366_vm8 = vcmask 908288   ;;  %vm390_vm9 = vcmask 900096   ;;  %vm414_vm10 = vcmask 785408   ;;  %v645_v51 = vld [vmem:[%s811_s1] ss:$8 sps:$4 sm:$0xff]  }
  0x93   : > { %vm425_vm11 = vcmask 777216   ;;  %vm449_vm12 = vcmask 769024  }
  0x95   : > { %349 = vrot.lane.b32.xlu1 %v599_v54, %s666_s27 }
  0x96   : > { %325 = vrot.lane.b32.xlu0 %v596_v57, %s664_s25 }
  0x99   : > { %386 = vrot.lane.b32.xlu1 %v603_v61, %s667_s28 }
  0x9a   : > { %388 = vrot.lane.b32.xlu0 %v604_v62, %s667_s28 }
  0x9d   : > { %384 = vrot.lane.b32.xlu1 %v602_v63, %s667_s28 }
  0x9e   : > { %423 = vrot.lane.b32.xlu0 %v725_v14, %s668_s29  ;;  %v274_v14 = vsel %vm272_vm5, %v710_v9, 0  ;;  %v457_v9 = vld [vmem:[%s812_s2 + $0x8] sm:$0xff] }
  0x9f   : > { %v609_v12 = vcombine.high %v274_v14, %v276_v16  ;;  %v608_v17 = vcombine.low %v274_v14, %v276_v16 }
  0xa1   : > { %421 = vrot.lane.b32.xlu1 %v716_v11, %s668_s29  ;;  %v610_v11 = vcombine.low %v275_v5, %v277_v6 }
  0xa2   : > { %410 = vrot.lane.b32.xlu0 %v606_v4, %s665_s26 }
  0xa5   : > { %419 = vrot.lane.b32.xlu1 %v729_v15, %s668_s29  ;;  %v363_v15 = vpop.permute.xlu0 %362 }
  0xa6   : > { %408 = vrot.lane.b32.xlu0 %v605_v8, %s665_s26  ;;  %v368_v32 = vsel %vm366_vm8, %v363_v15, %v365_v10 }
  0xa9   : > { %447 = vrot.lane.b32.xlu1 %v610_v11, %s669_s5  ;;  %v361_v19 = vpop.permute.xlu0 %360 }
  0xaa   : > { %445 = vrot.lane.b32.xlu0 %v609_v12, %s669_s5  ;;  %v367_v35 = vsel %vm366_vm8, %v361_v19, %v363_v15 }
  0xad   : > { %460 = vperm.xlu1 %640, %v456_v13  }
  0xae   : > { %443 = vrot.lane.b32.xlu0 %v608_v17, %s669_s5 }
  0xb2   : > { %465 = vperm.xlu0 %641, %v457_v9  }
  0xfb   : > { %v330_v18 = vpop.permute.xlu1 %329 }
  0xff   : > { %v413_v20 = vpop.permute.xlu1 %412 }
 0x100   : > { %v354_v21 = vpop.permute.xlu0 %353 }
 0x103   : > { %v352_v22 = vpop.permute.xlu1 %351 }
 0x104   : > { %v328_v23 = vpop.permute.xlu0 %327  ;;  %v357_v28 = vsel %vm355_vm7, %v352_v22, %v354_v21 }
 0x105   : > { %v333_v24 = vsel %vm331_vm6, %v328_v23, %v330_v18 }
 0x106   : > { %485 = vmatprep.subr.bf16.mxu0 %v333_v24 }
 0x107   : > { %v350_v25 = vpop.permute.xlu1 %349 }
 0x108   : > { %v326_v26 = vpop.permute.xlu0 %325  ;;  %v356_v31 = vsel %vm355_vm7, %v350_v25, %v352_v22 }
 0x109   : > { %v332_v27 = vsel %vm331_vm6, %v326_v26, %v328_v23 }
 0x10a   : > { %486 = vmatpush1.bf16.msra.mxu0 %v332_v27 }
 0x10b   : > { %487 = vmatprep.subr.bf16.mxu0 %v357_v28  ;;  %v387_v29 = vpop.permute.xlu1 %386 }
 0x10c   : > { %v389_v30 = vpop.permute.xlu0 %388 }
 0x10d   : > { %v392_v36 = vsel %vm390_vm9, %v387_v29, %v389_v30 }
 0x10e   : > { %488 = vmatpush1.bf16.msra.mxu0 %v356_v31 }
 0x10f   : > { %489 = vmatprep.subr.bf16.mxu0 %v368_v32  ;;  %v385_v33 = vpop.permute.xlu1 %384 }
 0x110   : > { %v424_v34 = vpop.permute.xlu0 %423  ;;  %v391_v39 = vsel %vm390_vm9, %v385_v33, %v387_v29 }
 0x112   : > { %490 = vmatpush1.bf16.msra.mxu0 %v367_v35 }
 0x113   : > { %491 = vmatprep.subr.bf16.mxu0 %v392_v36  ;;  %v422_v37 = vpop.permute.xlu1 %421 }
 0x114   : > { %v411_v38 = vpop.permute.xlu0 %410  ;;  %v427_v44 = vsel %vm425_vm11, %v422_v37, %v424_v34 }
 0x115   : > { %v416_v40 = vsel %vm414_vm10, %v411_v38, %v413_v20 }
 0x116   : > { %492 = vmatpush1.bf16.msra.mxu0 %v391_v39 }
 0x117   : > { %493 = vmatprep.subr.bf16.mxu0 %v416_v40  ;;  %v420_v41 = vpop.permute.xlu1 %419 }
 0x118   : > { %v409_v42 = vpop.permute.xlu0 %408  ;;  %v426_v47 = vsel %vm425_vm11, %v420_v41, %v422_v37 }
 0x119   : > { %v415_v43 = vsel %vm414_vm10, %v409_v42, %v411_v38 }
 0x11a   : > { %494 = vmatpush1.bf16.msra.mxu0 %v415_v43 }
 0x11b   : > { %495 = vmatprep.subr.bf16.mxu0 %v427_v44  ;;  %v448_v45 = vpop.permute.xlu1 %447 }
 0x11c   : > { %v446_v46 = vpop.permute.xlu0 %445 }
 0x11d   : > { %v451_v48 = vsel %vm449_vm12, %v446_v46, %v448_v45 }
 0x11e   : > { %496 = vmatpush1.bf16.msra.mxu0 %v426_v47 }
 0x11f   : > { %497 = vmatprep.subr.bf16.mxu0 %v451_v48 }
 0x120   : > { %v444_v49 = vpop.permute.xlu0 %443 }
 0x121   : > { %v450_v50 = vsel %vm449_vm12, %v444_v49, %v446_v46 }
 0x122   : > { %498 = vmatpush1.bf16.msra.mxu0 %v450_v50 }
 0x125   : > { %514 = vmatmul.mubr.bf16.vlgmr.msra.gmra.mrb[0].mxu0 %v645_v51 }
 0x12c   : > { %v461_v52 = vpop.permute.xlu1 %460 }
 0x131   : > { %v466_v54 = vpop.permute.xlu0 %465 }
 0x1f8   : > { %v515_v53 = vpop.f32.mrb[0].mxu0 }
 0x1f9   : > { %v516_v55 = vadd.f32 %v515_v53, %v461_v52  ;;  %v517_v56 = vpop.f32.mrb[1].mxu0 }
 0x1fa   : > { %v518_v57 = vadd.f32 %v517_v56, %v461_v52  ;;  %v519_v58 = vpop.f32.mrb[2].mxu0 }
 0x1fb   : > { %524 = vst [vmem:[%s170_s17] sm:$0xff] %v516_v55  ;;  %v520_v59 = vadd.f32 %v519_v58, %v466_v54  ;;  %v521_v60 = vpop.f32.mrb[3].mxu0 }
 0x1fc   : > { %525 = vst [vmem:[%s170_s17 + $0x8] sm:$0xff] %v518_v57  ;;  %v522_v61 = vadd.f32 %v521_v60, %v466_v54 }
 0x1fd   : > { %526 = vst [vmem:[%s170_s17 + $0x10] sm:$0xff] %v520_v59 }
 0x1fe   : > { %527 = vst [vmem:[%s170_s17 + $0x18] sm:$0xff] %v522_v61 }
 0x1ff PF: > { %s13_s12 = sadd.s32 1, %s654_s12  }
 0x200   : > { %p10_p4 = scmp.ge.s32.totalorder %s13_s12, 4  }
 0x202   :  { %12 = sbr.rel (!%p10_p4) target bundleno = 1 (0x1), region = 62 }

</bundles_post_ra>
